<compile_context>
chip_gen: v7x
topology: tpu7x:2x2x1
jax: 0.10.0
libtpu: 0.0.40
codegen_flags: <defaults>
</compile_context>

<pallas_src>
import functools

import jax
import jax.numpy as jnp
from jax.experimental import pallas as pl
from jax.experimental.pallas import tpu as pltpu


def _ce_loss_kernel(pred_ref, tgt_ref, out_ref, *, block_cols, valid_cols_last):
    x = pred_ref[...].astype(jnp.float32)   # (1, C, bc)  channels on sublanes
    t = tgt_ref[...].astype(jnp.float32)    # (1, C, bc)  spatial on lanes

    # numerically stable log-sum-exp over the channel axis (axis=1)
    m = jnp.max(x, axis=1, keepdims=True)                                  # (1,1,bc)
    lse = jnp.log(jnp.sum(jnp.exp(x - m), axis=1, keepdims=True)) + m      # (1,1,bc)

    #   sum_c t_c * log_softmax(x)_c  ==  sum_c t_c * x_c  -  (sum_c t_c) * lse
    tx = jnp.sum(t * x, axis=1, keepdims=True)                             # (1,1,bc)
    ts = jnp.sum(t, axis=1, keepdims=True)                                 # (1,1,bc)
    per_pixel = tx - ts * lse                                              # (1,1,bc)

    # Mask the lane tail of the last spatial block: those columns are
    # out-of-bounds garbage and could be inf/NaN -> must be zeroed before sum.
    j = pl.program_id(1)
    limit = jnp.where(j == pl.num_programs(1) - 1, valid_cols_last, block_cols)
    col = jax.lax.broadcasted_iota(jnp.int32, per_pixel.shape, 2)
    per_pixel = jnp.where(col < limit, per_pixel, 0.0)

    # One partial sum per grid point, written to its own lane-dense tile.
    out_ref[...] = jnp.full(out_ref.shape, jnp.sum(per_pixel), dtype=out_ref.dtype)


def ce_loss(pred, target, *, target_tile_bytes=2 * 1024 * 1024):
    """pred, target: NCHW arrays of identical shape. Returns scalar f32 loss."""
    assert pred.shape == target.shape
    n, c, h, w = pred.shape
    s = h * w
    m_total = n * s

    # Free reshapes (NCHW is contiguous as (N, C, H*W)); no transpose, no pad.
    x3 = pred.reshape(n, c, s)
    t3 = target.reshape(n, c, s)

    # Lane-dense spatial tiling: ~target_tile_bytes per input block, rounded to
    # a multiple of 128 lanes (or the full spatial dim if it is small).
    bytes_per_col = c * 4
    bc = max(128, (target_tile_bytes // bytes_per_col) // 128 * 128)
    if s <= bc:
        bc = s                       # full spatial extent -> always a legal block
    num_blocks = pl.cdiv(s, bc)
    valid_cols_last = s - (num_blocks - 1) * bc

    kernel = functools.partial(
        _ce_loss_kernel, block_cols=bc, valid_cols_last=valid_cols_last)

    in_bytes = x3.size * x3.dtype.itemsize + t3.size * t3.dtype.itemsize
    out_bytes = n * num_blocks * 8 * 128 * 4
    cost = pl.CostEstimate(
        flops=6 * n * c * s,
        transcendentals=n * s * (c + 1),
        bytes_accessed=in_bytes + out_bytes,
    )

    partials = pl.pallas_call(
        kernel,
        out_shape=jax.ShapeDtypeStruct((n, num_blocks, 8, 128), jnp.float32),
        grid_spec=pltpu.PrefetchScalarGridSpec(
            num_scalar_prefetch=0,
            grid=(n, num_blocks),
            in_specs=[
                pl.BlockSpec((1, c, bc), lambda b, j: (b, 0, j)),
                pl.BlockSpec((1, c, bc), lambda b, j: (b, 0, j)),
            ],
            out_specs=pl.BlockSpec((1, 1, 8, 128), lambda b, j: (b, j, 0, 0)),
        ),
        compiler_params=pltpu.CompilerParams(
            dimension_semantics=("parallel", "parallel"),
            vmem_limit_bytes=32 * 1024 * 1024,
        ),
        cost_estimate=cost,
    )(x3, t3)

    # Tiny final reduction + negate + mean-scale in plain JAX.
    total = jnp.sum(partials[:, :, 0, 0])
    return -(total / jnp.float32(m_total))


def ce_loss_ref(pred, target):
    """Pure-JAX reference matching the PyTorch module."""
    logp = jax.nn.log_softmax(pred, axis=1)
    per_pixel = jnp.sum(target * logp, axis=1)
    return -jnp.mean(per_pixel)


if __name__ == "__main__":
    key = jax.random.PRNGKey(0)
    k1, k2 = jax.random.split(key)

    # small, module-consistent shapes: NCHW
    n, c, h, w = 2, 4, 16, 16
    pred = jax.random.normal(k1, (n, c, h, w), dtype=jnp.float32)
    # soft targets (a probability distribution over channels)
    target = jax.nn.softmax(
        jax.random.normal(k2, (n, c, h, w), dtype=jnp.float32), axis=1)

    loss = jax.jit(ce_loss)(pred, target)
    loss = jax.block_until_ready(loss)

    ref = ce_loss_ref(pred, target)
    assert jnp.allclose(loss, ref, rtol=1e-4, atol=1e-5), (loss, ref)

    print("KERNEL_OK")
</pallas_src>

<mosaic_0001>
module attributes {stable_mosaic.version = 11 : i64} {
  func.func @_ce_loss_kernel(%arg0: i32, %arg1: i32, %arg2: memref<1x4x256xf32, #tpu.memory_space<vmem>>, %arg3: memref<1x4x256xf32, #tpu.memory_space<vmem>>, %arg4: memref<1x1x8x128xf32, #tpu.memory_space<vmem>>) attributes {dimension_semantics = [#tpu.dimension_semantics<parallel>, #tpu.dimension_semantics<parallel>], iteration_bounds = array<i64: 2, 1>, scalar_prefetch = 0 : i64, scratch_operands = 0 : i64, tpu.core_type = #tpu.core_type<tc>, window_params = [{transform_indices = @transform_0, window_bounds = array<i64: 1, 4, 256>}, {transform_indices = @transform_1, window_bounds = array<i64: 1, 4, 256>}, {transform_indices = @transform_2, window_bounds = array<i64: 1, 1, 8, 128>}]} {
    %c0 = arith.constant 0 : index
    %c0_0 = arith.constant 0 : index
    %c0_1 = arith.constant 0 : index
    %0 = vector.load %arg2[%c0, %c0_0, %c0_1] : memref<1x4x256xf32, #tpu.memory_space<vmem>>, vector<1x4x256xf32>
    %c0_2 = arith.constant 0 : index
    %c0_3 = arith.constant 0 : index
    %c0_4 = arith.constant 0 : index
    %1 = vector.load %arg3[%c0_2, %c0_3, %c0_4] : memref<1x4x256xf32, #tpu.memory_space<vmem>>, vector<1x4x256xf32>
    %cst = arith.constant dense<0xFF800000> : vector<1x256xf32>
    %2 = vector.multi_reduction <maximumf>, %0, %cst [1] : vector<1x4x256xf32> to vector<1x256xf32>
    %3 = vector.shape_cast %2 : vector<1x256xf32> to vector<1x1x256xf32>
    %4 = vector.broadcast %3 : vector<1x1x256xf32> to vector<1x4x256xf32>
    %5 = arith.subf %0, %4 : vector<1x4x256xf32>
    %6 = math.exp %5 : vector<1x4x256xf32>
    %cst_5 = arith.constant dense<0.000000e+00> : vector<1x256xf32>
    %7 = vector.multi_reduction <add>, %6, %cst_5 [1] : vector<1x4x256xf32> to vector<1x256xf32>
    %8 = vector.shape_cast %7 : vector<1x256xf32> to vector<1x1x256xf32>
    %9 = math.log %8 : vector<1x1x256xf32>
    %10 = arith.addf %9, %3 : vector<1x1x256xf32>
    %11 = arith.mulf %1, %0 : vector<1x4x256xf32>
    %cst_6 = arith.constant dense<0.000000e+00> : vector<1x256xf32>
    %12 = vector.multi_reduction <add>, %11, %cst_6 [1] : vector<1x4x256xf32> to vector<1x256xf32>
    %13 = vector.shape_cast %12 : vector<1x256xf32> to vector<1x1x256xf32>
    %cst_7 = arith.constant dense<0.000000e+00> : vector<1x256xf32>
    %14 = vector.multi_reduction <add>, %1, %cst_7 [1] : vector<1x4x256xf32> to vector<1x256xf32>
    %15 = vector.shape_cast %14 : vector<1x256xf32> to vector<1x1x256xf32>
    %16 = arith.mulf %15, %10 : vector<1x1x256xf32>
    %17 = arith.subf %13, %16 : vector<1x1x256xf32>
    %c0_i32 = arith.constant 0 : i32
    %18 = arith.cmpi eq, %arg1, %c0_i32 : i32
    %c256_i32 = arith.constant 256 : i32
    %c256_i32_8 = arith.constant 256 : i32
    %19 = arith.select %18, %c256_i32, %c256_i32_8 : i32
    %20 = tpu.iota {dimensions = array<i32: 2>} : vector<1x1x256xi32>
    %21 = vector.broadcast %19 : i32 to vector<1x1x256xi32>
    %22 = arith.cmpi slt, %20, %21 : vector<1x1x256xi32>
    %cst_9 = arith.constant 0.000000e+00 : f32
    %23 = vector.broadcast %cst_9 : f32 to vector<1x1x256xf32>
    %24 = arith.select %22, %17, %23 : vector<1x1x256xi1>, vector<1x1x256xf32>
    %25 = vector.shape_cast %24 : vector<1x1x256xf32> to vector<1x1x1x256xf32>
    %cst_10 = arith.constant dense<0.000000e+00> : vector<1xf32>
    %26 = vector.multi_reduction <add>, %25, %cst_10 [1, 2, 3] : vector<1x1x1x256xf32> to vector<1xf32>
    %27 = vector.shape_cast %26 : vector<1xf32> to vector<1x1x1x1xf32>
    %28 = vector.extract %27[0, 0, 0, 0] : f32 from vector<1x1x1x1xf32>
    %29 = vector.broadcast %28 : f32 to vector<1x1x8x128xf32>
    %c0_11 = arith.constant 0 : index
    %c0_12 = arith.constant 0 : index
    %c0_13 = arith.constant 0 : index
    %c0_14 = arith.constant 0 : index
    %30 = vector.load %arg4[%c0_11, %c0_12, %c0_13, %c0_14] : memref<1x1x8x128xf32, #tpu.memory_space<vmem>>, vector<1x1x8x128xf32>
    tpu.vector_store %arg4[%c0_11, %c0_12, %c0_13, %c0_14], %29 {strides = array<i32>} : memref<1x1x8x128xf32, #tpu.memory_space<vmem>>, vector<1x1x8x128xf32>,
    return
  }
  func.func @transform_0(%arg0: i32, %arg1: i32) -> (i32, i32, i32) {
    %c0_i32 = arith.constant 0 : i32
    %c0_i32_0 = arith.constant 0 : i32
    return %arg0, %c0_i32, %arg1 : i32, i32, i32
  }
  func.func @transform_1(%arg0: i32, %arg1: i32) -> (i32, i32, i32) {
    %c0_i32 = arith.constant 0 : i32
    %c0_i32_0 = arith.constant 0 : i32
    return %arg0, %c0_i32, %arg1 : i32, i32, i32
  }
  func.func @transform_2(%arg0: i32, %arg1: i32) -> (i32, i32, i32, i32) {
    %c0_i32 = arith.constant 0 : i32
    %c0_i32_0 = arith.constant 0 : i32
    %c0_i32_1 = arith.constant 0 : i32
    return %arg0, %arg1, %c0_i32, %c0_i32_0 : i32, i32, i32, i32
  }
}

</mosaic_0001>

<bundles_post_ra>
// kernel: ce_loss.1
= control target key start
LH: loop header
LB: loop body
LE: loop exit
PB: predicated region body
PF: predicated region fallthrough
CT: control target
= control target key end

     0   :  { %s507_s9 = smov 0   ;;  %s509_s10 = smov 0   ;;  %s556_s0 = inlined_call_operand.vmem [shape: f32[2,4,256], index: 0, kind: input, shape index: {}]   ;;  %s557_s1 = inlined_call_operand.vmem [shape: f32[2,4,256], index: 1, kind: input, shape index: {}]   ;;  %s558_s2 = inlined_call_operand.vmem [shape: f32[2,1,8,128], index: 2, kind: output, shape index: {}]  }
   0x1   :  { %s511_s11 = smov 0  }
   0x2 LB: > { %s24_s12 = sadd.s32 1, %s486_s10  ;;  %p424_p0 = scmp.ge.s32.totalorder %s490_s11, 1  ;;  %s490_s11 = sphi %s511_s11, %s12_s11   ;;  %s486_s10 = sphi %s509_s10, %s560_s10   ;;  %s482_s9 = sphi %s507_s9, %s559_s9  }
   0x3   : > { %p26_p1 = scmp.ge.s32.totalorder %s24_s12, 2  ;;  %p150_p2 = scmp.lt.s32.totalorder %s490_s11, 3 }
   0x5   : > { %s562_s12 = smov (%p26_p1, %s24_s12), 0  ;;  %p151_p3 = pnand %p424_p0, %p150_p2 }
   0x6   : > { %p188_p4 = scmp.lt.s32.totalorder (!%p151_p3), %s482_s9, 1  ;;  %vm219_vm0 = vcmask (!%p151_p3), 1043456   ;;  %vm310_vm1 = vcmask (!%p151_p3), 1040384  }
   0x7   : > { %154 = sbr.rel (%p151_p3) target bundleno = 293 (0x125), region = 28 }
   0xe   : > { %s564_s9 = smov (!%p188_p4, %s482_s9), 1 }
   0xf   : > { %s525_s13 = sshll.u32 %s564_s9, 3 }
  0x10   : > { %s195_s16 = scalar_lea.vmem %s556_s0, %s525_s13  ;;  %s205_s19 = scalar_lea.vmem %s557_s1, %s525_s13 }
  0x11   : > { %v214_v0 = vld [vmem:[%s195_s16] sm:$0xff]  ;;  %s213_s22 = scalar_lea.vmem %s558_s2, %s525_s13 }
  0x12   : > { %v217_v1 = vcombine.high %v214_v0, %v214_v0  ;;  %v220_v2 = vsel %vm219_vm0, %v214_v0, -inf  ;;  %v215_v19 = vld [vmem:[%s205_s19] sm:$0xff] }
  0x13   : > { %v221_v3 = vrot.slane %v220_v2, 4  ;;  %v264_v20 = vmul.f32 %v215_v19, %v214_v0  ;;  %v283_v22 = vcombine.high %v215_v19, %v215_v19  ;;  %v285_v27 = vsel %vm219_vm0, %v215_v19, 0.0 }
  0x14   : > { %v227_v4 = vsel %vm219_vm0, %v217_v1, -inf  ;;  %v286_v33 = vrot.slane %v285_v27, 4 }
  0x15   : > { %v222_v5 = vmax.f32 %v220_v2, %v221_v3  ;;  %v228_v6 = vrot.slane %v227_v4, 4  ;;  %v266_v26 = vcombine.high %v264_v20, %v264_v20  ;;  %v268_v31 = vsel %vm219_vm0, %v264_v20, 0.0 }
  0x16   : > { %v292_v32 = vsel %vm219_vm0, %v283_v22, 0.0  ;;  %v269_v37 = vrot.slane %v268_v31, 4  ;;  %v287_v42 = vadd.f32 %v286_v33, %v285_v27 }
  0x17   : > { %v223_v7 = vrot.slane %v222_v5, 2  ;;  %v229_v8 = vmax.f32 %v227_v4, %v228_v6  ;;  %v275_v36 = vsel %vm219_vm0, %v266_v26, 0.0  ;;  %v293_v38 = vrot.slane %v292_v32, 4 }
  0x18   : > { %v276_v41 = vrot.slane %v275_v36, 4  ;;  %v270_v45 = vadd.f32 %v269_v37, %v268_v31  ;;  %v288_v50 = vrot.slane %v287_v42, 2 }
  0x19   : > { %v224_v9 = vmax.f32 %v222_v5, %v223_v7  ;;  %v230_v10 = vrot.slane %v229_v8, 2  ;;  %v294_v46 = vadd.f32 %v293_v38, %v292_v32 }
  0x1a   : > { %v277_v49 = vadd.f32 %v276_v41, %v275_v36  ;;  %v271_v52 = vrot.slane %v270_v45, 2  ;;  %v289_v55 = vadd.f32 %v288_v50, %v287_v42 }
  0x1b   : > { %v225_v11 = vrot.slane %v224_v9, 1  ;;  %v231_v12 = vmax.f32 %v229_v8, %v230_v10  ;;  %v295_v53 = vrot.slane %v294_v46, 2 }
  0x1c   : > { %v278_v54 = vrot.slane %v277_v49, 2  ;;  %v272_v56 = vadd.f32 %v271_v52, %v270_v45  ;;  %v290_v59 = vrot.slane %v289_v55, 1 }
  0x1d   : > { %v226_v13 = vmax.f32 %v224_v9, %v225_v11  ;;  %v232_v14 = vrot.slane %v231_v12, 1  ;;  %v296_v57 = vadd.f32 %v295_v53, %v294_v46 }
  0x1e   : > { %v279_v58 = vadd.f32 %v278_v54, %v277_v49  ;;  %v273_v60 = vrot.slane %v272_v56, 1  ;;  %v291_v1 = vadd.f32 %v290_v59, %v289_v55 }
  0x1f   : > { %v233_v15 = vmax.f32 %v231_v12, %v232_v14  ;;  %v297_v61 = vrot.slane %v296_v57, 1 }
  0x20   : > { %v274_v5 = vadd.f32 %v273_v60, %v272_v56 }
  0x21   : > { %v236_v16 = vcombine.low %v226_v13, %v233_v15  ;;  %v298_v6 = vadd.f32 %v297_v61, %v296_v57 }
  0x23   : > { %v238_v17 = vsub.f32 %v214_v0, %v236_v16  ;;  %v280_v0 = vrot.slane %v279_v58, 1 }
  0x25   : > { %v239_v18 = vmul.f32 1.442695, %v238_v17  ;;  %v281_v8 = vadd.f32 %v280_v0, %v279_v58 }
  0x27   : > { %462 = vpow2.f32 %v239_v18 }
  0x31   : > { %v463_v21 = vpop.eup %462 }
  0x32   : > { %v242_v23 = vcombine.high %v463_v21, %v463_v21  ;;  %v244_v24 = vsel %vm219_vm0, %v463_v21, 0.0 }
  0x33   : > { %v245_v25 = vrot.slane %v244_v24, 4 }
  0x34   : > { %v251_v28 = vsel %vm219_vm0, %v242_v23, 0.0 }
  0x35   : > { %v246_v29 = vadd.f32 %v245_v25, %v244_v24  ;;  %v252_v30 = vrot.slane %v251_v28, 4 }
  0x37   : > { %v247_v34 = vrot.slane %v246_v29, 2  ;;  %v253_v35 = vadd.f32 %v252_v30, %v251_v28 }
  0x39   : > { %v248_v39 = vadd.f32 %v247_v34, %v246_v29  ;;  %v254_v40 = vrot.slane %v253_v35, 2 }
  0x3b   : > { %v249_v43 = vrot.slane %v248_v39, 1  ;;  %v255_v44 = vadd.f32 %v254_v40, %v253_v35 }
  0x3d   : > { %v250_v47 = vadd.f32 %v249_v43, %v248_v39  ;;  %v256_v48 = vrot.slane %v255_v44, 1 }
  0x3f   : > { %v257_v51 = vadd.f32 %v256_v48, %v255_v44  ;;  %464 = vlog2.f32 %v250_v47 }
  0x41   : > { %466 = vlog2.f32 %v257_v51 }
  0x49   : > { %v465_v62 = vpop.eup %464 }
  0x4a   : > { %v259_v63 = vmul.f32 0.6931472, %v465_v62 }
  0x4b   : > { %v467_v2 = vpop.eup %466 }
  0x4c   : > { %v261_v3 = vmul.f32 0.6931472, %v467_v2  ;;  %v262_v4 = vadd.f32 %v259_v63, %v226_v13 }
  0x4e   : > { %v263_v7 = vadd.f32 %v261_v3, %v233_v15  ;;  %v299_v9 = vmul.f32 %v291_v1, %v262_v4 }
  0x50   : > { %v300_v10 = vmul.f32 %v298_v6, %v263_v7  ;;  %v301_v11 = vsub.f32 %v274_v5, %v299_v9 }
  0x52   : > { %v302_v12 = vsub.f32 %v281_v8, %v300_v10  ;;  %v311_v14 = vsel %vm310_vm1, %v301_v11, 0.0 }
  0x54   : > { %v312_v16 = vsel %vm310_vm1, %v302_v12, 0.0 }
  0x55   : > { %v313_v17 = vadd.f32 %v312_v16, %v311_v14 }
  0x57   : > { %314 = vadd.xlane.f32.xlu0 %v313_v17 }
  0xe4   : > { %v315_v18 = vpop.xlane.xlu0 %314 }
  0xe5   : > { %v316_v19 = vrot.slane %v315_v18, 4 }
  0xe7   : > { %v317_v20 = vadd.f32 %v316_v19, %v315_v18 }
  0xe9   : > { %v318_v21 = vrot.slane %v317_v20, 2 }
  0xeb   : > { %v319_v22 = vadd.f32 %v318_v21, %v317_v20 }
  0xed   : > { %v320_v13 = vrot.slane %v319_v22, 1 }
  0xef   : > { %v321_v23 = vadd.f32 %v320_v13, %v319_v22 }
  0xf1   : > { %434 = vpush %v321_v23 }
 0x122   : > { %s435_s23 = spop %434 }
 0x123   : > { %v323_v15 = vstv %s435_s23 }
 0x124   : > { %324 = vst [vmem:[%s213_s22] sm:$0xff] %v323_v15 }
 0x125 PF: > { %s12_s11 = sadd.s32 1, %s490_s11   ;;  %s559_s9 = smov %s486_s10 }
 0x126   : > { %p9_p5 = scmp.ge.s32.totalorder %s12_s11, 4   ;;  %s560_s10 = smov %s562_s12 }
 0x128   :  { %11 = sbr.rel (!%p9_p5) target bundleno = 2 (0x2), region = 61 }

</bundles_post_ra>
